<compile_context>
chip_gen: v7x
topology: tpu7x:2x2x1
jax: 0.10.0
libtpu: 0.0.40
codegen_flags: <defaults>
</compile_context>

<pallas_src>
import math

import jax
import jax.numpy as jnp
from jax.experimental import pallas as pl
from jax.experimental.pallas import tpu as pltpu

HIDDEN = 128
LANE = 128
SUBLANE = 8


def _round_up(x, m):
    return ((x + m - 1) // m) * m


# ---------------------------------------------------------------------------
# Kernel bodies
# ---------------------------------------------------------------------------
def _mlp_block(x, w1, b1, w2, b2, w3, b3, na_out):
    """fc1+relu -> fc2+relu -> fc3 on one (TB, num_inputs) tile; f32 accumulate."""
    h1 = jnp.dot(x.astype(w1.dtype), w1, preferred_element_type=jnp.float32)
    h1 = jnp.maximum(h1 + b1.astype(jnp.float32), 0.0)
    h2 = jnp.dot(h1.astype(w2.dtype), w2, preferred_element_type=jnp.float32)
    h2 = jnp.maximum(h2 + b2.astype(jnp.float32), 0.0)
    q = jnp.dot(h2.astype(w3.dtype), w3, preferred_element_type=jnp.float32)
    q = q + b3.astype(jnp.float32)
    if na_out < q.shape[-1]:  # drop the MXU lane padding before the HBM store
        q = q[:, :na_out]
    return q


def _dqn_kernel(x_ref, w1_ref, b1_ref, w2_ref, b2_ref, w3_ref, b3_ref, out_ref):
    out_ref[...] = _mlp_block(
        x_ref[...], w1_ref[...], b1_ref[...], w2_ref[...], b2_ref[...],
        w3_ref[...], b3_ref[...], out_ref.shape[-1]).astype(out_ref.dtype)


def _dqn_pair_kernel(x_ref,
                     w1o, b1o, w2o, b2o, w3o, b3o,
                     w1t, b1t, w2t, b2t, w3t, b3t,
                     qo_ref, qt_ref):
    x = x_ref[...]
    qo_ref[...] = _mlp_block(x, w1o[...], b1o[...], w2o[...], b2o[...],
                             w3o[...], b3o[...],
                             qo_ref.shape[-1]).astype(qo_ref.dtype)
    qt_ref[...] = _mlp_block(x, w1t[...], b1t[...], w2t[...], b2t[...],
                             w3t[...], b3t[...],
                             qt_ref.shape[-1]).astype(qt_ref.dtype)


# ---------------------------------------------------------------------------
# Wrapper helpers
# ---------------------------------------------------------------------------
def _pad_fc3(w3, b3):
    """Pad fc3 columns to a multiple of 128 for the MXU; report narrow output width."""
    num_actions = w3.shape[1]
    na_mxu = _round_up(num_actions, LANE)      # lane-aligned matmul inside VMEM
    na_out = _round_up(num_actions, SUBLANE)   # narrow HBM output (sliced in-kernel)
    if na_mxu != num_actions:
        w3 = jnp.pad(w3, ((0, 0), (0, na_mxu - num_actions)))
        b3 = jnp.pad(b3, ((0, 0), (0, na_mxu - num_actions)))
    return w3, b3, na_out


def _choose_tile(B, tb):
    """Batch tile: multiple of 8, and >=2 grid steps when B is big enough (megacore)."""
    tb = max(SUBLANE, _round_up(int(tb), SUBLANE))
    B8 = _round_up(B, SUBLANE)
    if B8 >= 2 * SUBLANE:
        tb = min(tb, _round_up((B8 + 1) // 2, SUBLANE))
    TB = min(tb, B8)
    B_pad = _round_up(B, TB)
    return TB, B_pad


def _vmem_limit(TB, num_inputs, na_mxu, na_out, weight_arrays, x_dtype):
    nbytes = lambda a: math.prod(a.shape) * a.dtype.itemsize
    weights = sum(nbytes(a) for a in weight_arrays)
    tile_in = TB * num_inputs * x_dtype.itemsize
    tile_out = TB * na_out * 4
    act = 2 * TB * HIDDEN * 4 + TB * na_mxu * 4     # f32 activation temporaries
    # weights x2 in case constant-index blocks still get double-buffered;
    # x/out tiles x2 for the pipeline; + 4 MiB margin. Flat-cap at 32 MiB (v7x).
    need = 2 * weights + 2 * (tile_in + tile_out) + act + (4 << 20)
    return int(min(max(need, 8 << 20), 32 << 20))


# ---------------------------------------------------------------------------
# Public forwards
# ---------------------------------------------------------------------------
def double_dqn_forward(x, params, *, tb=512, vmem_limit_bytes=None):
    """x: [B, num_inputs]. params: dict of w1,b1,w2,b2,w3,b3 in [in, out] layout."""
    w1, b1, w2, b2 = params["w1"], params["b1"], params["w2"], params["b2"]
    w3, b3, na_out = _pad_fc3(params["w3"], params["b3"])
    B, num_inputs = x.shape
    num_actions = params["w3"].shape[1]

    TB, B_pad = _choose_tile(B, tb)
    if B_pad != B:
        x = jnp.pad(x, ((0, B_pad - B), (0, 0)))

    if vmem_limit_bytes is None:
        vmem_limit_bytes = _vmem_limit(TB, num_inputs, w3.shape[1], na_out,
                                       (w1, b1, w2, b2, w3, b3), x.dtype)

    const2d = lambda i: (0, 0)  # weights/biases: same block every step -> resident
    q = pl.pallas_call(
        _dqn_kernel,
        out_shape=jax.ShapeDtypeStruct((B_pad, na_out), jnp.float32),
        grid=(B_pad // TB,),
        in_specs=[
            pl.BlockSpec((TB, num_inputs), lambda i: (i, 0)),   # pipelined x tile
            pl.BlockSpec(w1.shape, const2d), pl.BlockSpec(b1.shape, const2d),
            pl.BlockSpec(w2.shape, const2d), pl.BlockSpec(b2.shape, const2d),
            pl.BlockSpec(w3.shape, const2d), pl.BlockSpec(b3.shape, const2d),
        ],
        out_specs=pl.BlockSpec((TB, na_out), lambda i: (i, 0)),
        compiler_params=pltpu.CompilerParams(
            dimension_semantics=("parallel",),      # shard batch tiles across TCs
            vmem_limit_bytes=int(vmem_limit_bytes),
        ),
    )(x, w1, b1, w2, b2, w3, b3)

    return q[:B, :num_actions]


def double_dqn_pair_forward(x, online_params, target_params, *, tb=512,
                            vmem_limit_bytes=None):
    """Fused Double-DQN forward: online + target networks in ONE pallas_call.

    Same x tile feeds both heads; fixed launch/step overhead is paid once."""
    po, pt = online_params, target_params
    w3o, b3o, na_out = _pad_fc3(po["w3"], po["b3"])
    w3t, b3t, _ = _pad_fc3(pt["w3"], pt["b3"])
    weights = (po["w1"], po["b1"], po["w2"], po["b2"], w3o, b3o,
               pt["w1"], pt["b1"], pt["w2"], pt["b2"], w3t, b3t)
    B, num_inputs = x.shape
    num_actions = po["w3"].shape[1]

    TB, B_pad = _choose_tile(B, tb)
    if B_pad != B:
        x = jnp.pad(x, ((0, B_pad - B), (0, 0)))

    if vmem_limit_bytes is None:
        vmem_limit_bytes = _vmem_limit(TB, num_inputs, w3o.shape[1], na_out,
                                       weights, x.dtype)
        vmem_limit_bytes = int(min(vmem_limit_bytes + 2 * TB * na_out * 4, 32 << 20))

    const2d = lambda i: (0, 0)
    out_spec = pl.BlockSpec((TB, na_out), lambda i: (i, 0))
    qo, qt = pl.pallas_call(
        _dqn_pair_kernel,
        out_shape=(jax.ShapeDtypeStruct((B_pad, na_out), jnp.float32),
                   jax.ShapeDtypeStruct((B_pad, na_out), jnp.float32)),
        grid=(B_pad // TB,),
        in_specs=[pl.BlockSpec((TB, num_inputs), lambda i: (i, 0))]
                 + [pl.BlockSpec(w.shape, const2d) for w in weights],
        out_specs=(out_spec, out_spec),
        compiler_params=pltpu.CompilerParams(
            dimension_semantics=("parallel",),
            vmem_limit_bytes=int(vmem_limit_bytes),
        ),
    )(x, *weights)

    return qo[:B, :num_actions], qt[:B, :num_actions]


# ---------------------------------------------------------------------------
# Params / reference
# ---------------------------------------------------------------------------
def init_params(key, num_inputs, num_actions, dtype=jnp.bfloat16):
    """Mirrors PyTorch Linear init U(-1/sqrt(fan_in), 1/sqrt(fan_in)); [in, out] layout.

    bf16 default halves resident weight VMEM and weight DMA and runs the MXU at its
    native bf16 rate; the kernel still accumulates in f32."""
    def linear(k, fan_in, fan_out):
        kw, kb = jax.random.split(k)
        bound = 1.0 / math.sqrt(fan_in)
        w = jax.random.uniform(kw, (fan_in, fan_out), jnp.float32, -bound, bound)
        b = jax.random.uniform(kb, (1, fan_out), jnp.float32, -bound, bound)
        return w.astype(dtype), b.astype(dtype)

    k1, k2, k3 = jax.random.split(key, 3)
    w1, b1 = linear(k1, num_inputs, HIDDEN)
    w2, b2 = linear(k2, HIDDEN, HIDDEN)
    w3, b3 = linear(k3, HIDDEN, num_actions)
    return {"w1": w1, "b1": b1, "w2": w2, "b2": b2, "w3": w3, "b3": b3}


def _reference(x, p):
    f32 = lambda a: a.astype(jnp.float32)
    h1 = jnp.maximum(x @ f32(p["w1"]) + f32(p["b1"]), 0.0)
    h2 = jnp.maximum(h1 @ f32(p["w2"]) + f32(p["b2"]), 0.0)
    return h2 @ f32(p["w3"]) + f32(p["b3"])


if __name__ == "__main__":
    key = jax.random.PRNGKey(0)
    num_inputs, num_actions = 8, 4
    kx, kx2, kp, kpt = jax.random.split(key, 4)

    # f32 weights -> exact comparison against the f32 reference.
    params = init_params(kp, num_inputs, num_actions, dtype=jnp.float32)

    # Small batch: single grid step, narrow (8-wide) HBM output.
    x = jax.random.normal(kx, (8, num_inputs), jnp.float32)
    q = jax.block_until_ready(double_dqn_forward(x, params))
    assert q.shape == (8, num_actions)
    assert jnp.allclose(q, _reference(x, params), atol=1e-4, rtol=1e-4)

    # Larger, non-divisible batch: >=2 grid steps (megacore), partial-tile padding.
    x2 = jax.random.normal(kx2, (300, num_inputs), jnp.float32)
    q2 = jax.block_until_ready(double_dqn_forward(x2, params))
    assert q2.shape == (300, num_actions)
    assert jnp.allclose(q2, _reference(x2, params), atol=1e-4, rtol=1e-4)

    # Caller-supplied non-multiple-of-8 tile is rounded up instead of failing lowering.
    q3 = jax.block_until_ready(double_dqn_forward(x2, params, tb=100))
    assert jnp.allclose(q3, _reference(x2, params), atol=1e-4, rtol=1e-4)

    # bf16 weights (the default): f32 accumulate inside, loose tolerance vs. f32 ref.
    params_bf16 = init_params(kp, num_inputs, num_actions)
    qb = jax.block_until_ready(double_dqn_forward(x2, params_bf16))
    assert qb.shape == (300, num_actions)
    assert jnp.allclose(qb, _reference(x2, params_bf16), atol=2e-2, rtol=2e-2)

    # Fused online + target forward: one pallas_call, shared x DMA.
    params_t = init_params(kpt, num_inputs, num_actions, dtype=jnp.float32)
    qo, qt = jax.block_until_ready(double_dqn_pair_forward(x2, params, params_t))
    assert qo.shape == (300, num_actions) and qt.shape == (300, num_actions)
    assert jnp.allclose(qo, _reference(x2, params), atol=1e-4, rtol=1e-4)
    assert jnp.allclose(qt, _reference(x2, params_t), atol=1e-4, rtol=1e-4)

    print("KERNEL_OK")
</pallas_src>

<mosaic_0001>
module attributes {stable_mosaic.version = 11 : i64} {
  func.func @_dqn_kernel(%arg0: i32, %arg1: memref<8x8xf32, #tpu.memory_space<vmem>>, %arg2: memref<8x128xf32, #tpu.memory_space<vmem>>, %arg3: memref<1x128xf32, #tpu.memory_space<vmem>>, %arg4: memref<128x128xf32, #tpu.memory_space<vmem>>, %arg5: memref<1x128xf32, #tpu.memory_space<vmem>>, %arg6: memref<128x128xf32, #tpu.memory_space<vmem>>, %arg7: memref<1x128xf32, #tpu.memory_space<vmem>>, %arg8: memref<8x8xf32, #tpu.memory_space<vmem>>) attributes {dimension_semantics = [#tpu.dimension_semantics<parallel>], iteration_bounds = array<i64: 1>, scalar_prefetch = 0 : i64, scratch_operands = 0 : i64, tpu.core_type = #tpu.core_type<tc>, window_params = [{transform_indices = @transform_0, window_bounds = array<i64: 8, 8>}, {pipeline_mode = #tpu.pipeline_mode<synchronous>, transform_indices = @transform_1, window_bounds = array<i64: 8, 128>}, {pipeline_mode = #tpu.pipeline_mode<synchronous>, transform_indices = @transform_2, window_bounds = array<i64: 1, 128>}, {pipeline_mode = #tpu.pipeline_mode<synchronous>, transform_indices = @transform_3, window_bounds = array<i64: 128, 128>}, {pipeline_mode = #tpu.pipeline_mode<synchronous>, transform_indices = @transform_4, window_bounds = array<i64: 1, 128>}, {pipeline_mode = #tpu.pipeline_mode<synchronous>, transform_indices = @transform_5, window_bounds = array<i64: 128, 128>}, {pipeline_mode = #tpu.pipeline_mode<synchronous>, transform_indices = @transform_6, window_bounds = array<i64: 1, 128>}, {transform_indices = @transform_7, window_bounds = array<i64: 8, 8>}]} {
    %c0 = arith.constant 0 : index
    %c0_0 = arith.constant 0 : index
    %0 = vector.load %arg1[%c0, %c0_0] : memref<8x8xf32, #tpu.memory_space<vmem>>, vector<8x8xf32>
    %c0_1 = arith.constant 0 : index
    %c0_2 = arith.constant 0 : index
    %1 = vector.load %arg2[%c0_1, %c0_2] : memref<8x128xf32, #tpu.memory_space<vmem>>, vector<8x128xf32>
    %c0_3 = arith.constant 0 : index
    %c0_4 = arith.constant 0 : index
    %2 = vector.load %arg3[%c0_3, %c0_4] : memref<1x128xf32, #tpu.memory_space<vmem>>, vector<1x128xf32>
    %c0_5 = arith.constant 0 : index
    %c0_6 = arith.constant 0 : index
    %3 = vector.load %arg4[%c0_5, %c0_6] : memref<128x128xf32, #tpu.memory_space<vmem>>, vector<128x128xf32>
    %c0_7 = arith.constant 0 : index
    %c0_8 = arith.constant 0 : index
    %4 = vector.load %arg5[%c0_7, %c0_8] : memref<1x128xf32, #tpu.memory_space<vmem>>, vector<1x128xf32>
    %c0_9 = arith.constant 0 : index
    %c0_10 = arith.constant 0 : index
    %5 = vector.load %arg6[%c0_9, %c0_10] : memref<128x128xf32, #tpu.memory_space<vmem>>, vector<128x128xf32>
    %c0_11 = arith.constant 0 : index
    %c0_12 = arith.constant 0 : index
    %6 = vector.load %arg7[%c0_11, %c0_12] : memref<1x128xf32, #tpu.memory_space<vmem>>, vector<1x128xf32>
    %cst = arith.constant dense<0.000000e+00> : vector<8x128xf32>
    %7 = tpu.matmul %0, %1, %cst {dimension_numbers = #tpu.dot_dimension_numbers<[1], [0], [0], [1], [0, 0, 1, 1], [], []>} : vector<8x8xf32>, vector<8x128xf32>, vector<8x128xf32> -> vector<8x128xf32>
    %8 = vector.broadcast %2 : vector<1x128xf32> to vector<8x128xf32>
    %9 = arith.addf %7, %8 : vector<8x128xf32>
    %cst_13 = arith.constant 0.000000e+00 : f32
    %10 = vector.broadcast %cst_13 : f32 to vector<8x128xf32>
    %11 = arith.maximumf %9, %10 : vector<8x128xf32>
    %cst_14 = arith.constant dense<0.000000e+00> : vector<8x128xf32>
    %12 = tpu.matmul %11, %3, %cst_14 {dimension_numbers = #tpu.dot_dimension_numbers<[1], [0], [0], [1], [0, 0, 1, 1], [], []>} : vector<8x128xf32>, vector<128x128xf32>, vector<8x128xf32> -> vector<8x128xf32>
    %13 = vector.broadcast %4 : vector<1x128xf32> to vector<8x128xf32>
    %14 = arith.addf %12, %13 : vector<8x128xf32>
    %cst_15 = arith.constant 0.000000e+00 : f32
    %15 = vector.broadcast %cst_15 : f32 to vector<8x128xf32>
    %16 = arith.maximumf %14, %15 : vector<8x128xf32>
    %cst_16 = arith.constant dense<0.000000e+00> : vector<8x128xf32>
    %17 = tpu.matmul %16, %5, %cst_16 {dimension_numbers = #tpu.dot_dimension_numbers<[1], [0], [0], [1], [0, 0, 1, 1], [], []>} : vector<8x128xf32>, vector<128x128xf32>, vector<8x128xf32> -> vector<8x128xf32>
    %18 = vector.broadcast %6 : vector<1x128xf32> to vector<8x128xf32>
    %19 = arith.addf %17, %18 : vector<8x128xf32>
    %20 = vector.extract_strided_slice %19 {offsets = [0, 0], sizes = [8, 8], strides = [1, 1]} : vector<8x128xf32> to vector<8x8xf32>
    %c0_17 = arith.constant 0 : index
    %c0_18 = arith.constant 0 : index
    %21 = vector.load %arg8[%c0_17, %c0_18] : memref<8x8xf32, #tpu.memory_space<vmem>>, vector<8x8xf32>
    tpu.vector_store %arg8[%c0_17, %c0_18], %20 {strides = array<i32>} : memref<8x8xf32, #tpu.memory_space<vmem>>, vector<8x8xf32>,
    return
  }
  func.func @transform_0(%arg0: i32) -> (i32, i32) {
    %c0_i32 = arith.constant 0 : i32
    %c0_i32_0 = arith.constant 0 : i32
    return %arg0, %c0_i32 : i32, i32
  }
  func.func @transform_1(%arg0: i32) -> (i32, i32) {
    %c0_i32 = arith.constant 0 : i32
    %c0_i32_0 = arith.constant 0 : i32
    %c0_i32_1 = arith.constant 0 : i32
    return %c0_i32, %c0_i32_0 : i32, i32
  }
  func.func @transform_2(%arg0: i32) -> (i32, i32) {
    %c0_i32 = arith.constant 0 : i32
    %c0_i32_0 = arith.constant 0 : i32
    %c0_i32_1 = arith.constant 0 : i32
    return %c0_i32, %c0_i32_0 : i32, i32
  }
  func.func @transform_3(%arg0: i32) -> (i32, i32) {
    %c0_i32 = arith.constant 0 : i32
    %c0_i32_0 = arith.constant 0 : i32
    %c0_i32_1 = arith.constant 0 : i32
    return %c0_i32, %c0_i32_0 : i32, i32
  }
  func.func @transform_4(%arg0: i32) -> (i32, i32) {
    %c0_i32 = arith.constant 0 : i32
    %c0_i32_0 = arith.constant 0 : i32
    %c0_i32_1 = arith.constant 0 : i32
    return %c0_i32, %c0_i32_0 : i32, i32
  }
  func.func @transform_5(%arg0: i32) -> (i32, i32) {
    %c0_i32 = arith.constant 0 : i32
    %c0_i32_0 = arith.constant 0 : i32
    %c0_i32_1 = arith.constant 0 : i32
    return %c0_i32, %c0_i32_0 : i32, i32
  }
  func.func @transform_6(%arg0: i32) -> (i32, i32) {
    %c0_i32 = arith.constant 0 : i32
    %c0_i32_0 = arith.constant 0 : i32
    %c0_i32_1 = arith.constant 0 : i32
    return %c0_i32, %c0_i32_0 : i32, i32
  }
  func.func @transform_7(%arg0: i32) -> (i32, i32) {
    %c0_i32 = arith.constant 0 : i32
    %c0_i32_0 = arith.constant 0 : i32
    return %arg0, %c0_i32 : i32, i32
  }
}

</mosaic_0001>

<bundles_post_ra>
// kernel: tpu_custom_call.1
= control target key start
LH: loop header
LB: loop body
LE: loop exit
PB: predicated region body
PF: predicated region fallthrough
CT: control target
= control target key end

     0   :  { %12 = vsyncpa [#allocation3], 0  ;;  %s798_s0 = inlined_call_operand.hbm [shape: f32[8,8], index: 0, kind: input, shape index: {}]   ;;  %s799_s1 = inlined_call_operand.hbm [shape: f32[8,128], index: 1, kind: input, shape index: {}]   ;;  %s800_s2 = inlined_call_operand.vmem [shape: f32[1,128], index: 2, kind: input, shape index: {}]   ;;  %s801_s3 = inlined_call_operand.hbm [shape: f32[128,128], index: 3, kind: input, shape index: {}]   ;;  %s802_s4 = inlined_call_operand.vmem [shape: f32[1,128], index: 4, kind: input, shape index: {}]   ;;  %s803_s5 = inlined_call_operand.hbm [shape: f32[128,128], index: 5, kind: input, shape index: {}]   ;;  %s804_s6 = inlined_call_operand.vmem [shape: f32[1,128], index: 6, kind: input, shape index: {}]   ;;  %s805_s7 = inlined_call_operand.hbm [shape: f32[8,8], index: 7, kind: output, shape index: {}]  }
   0x1   :  { %13 = vsyncpa [#allocation6], 0 }
   0x2   :  { %14 = vsyncpa [#allocation9], 0 }
   0x3   :  { %15 = vsyncpa [#allocation4], 0  ;;  %s658_s24 = smov [#allocation5]   ;;  %s659_s26 = smov [#allocation2]  }
   0x4   :  { %s32_s25 = sshll.u32 %s658_s24, 4  ;;  %s22_s27 = sshll.u32 %s659_s26, 4  ;;  %s33_s25 = int_to_ptr.vmem [resolvable:$true] %s32_s25  ;;  %s23_s27 = int_to_ptr.vmem [resolvable:$true] %s22_s27 }
   0x5   :  { %s540_s30 = scalar_lea.hbm %s799_s1, 128 }
   0x6   :  { %p541_p0 = scmp.ne.s32.totalorder %s799_s1, %s540_s30  ;;  %p544_p1 = scmp.lt.u32.totalorder %s540_s30, %s799_s1 }
   0x8   :  { %p546_p2 = pnand %p544_p1, %p541_p0 }
   0xa   :  { %549 = shalt.err (!%p546_p2)
}
   0xb   :  { %s550_s12 = scalar_lea.vmem %s33_s25, 128  ;;  %p555_p4 = scmp.lt.s32.totalorder %s33_s25, %s33_s25 }
   0xc   :  { %p551_p3 = scmp.ne.s32.totalorder %s33_s25, %s550_s12  ;;  %p556_p5 = scmp.lt.s32.totalorder %s550_s12, %s550_s12 }
   0xe   :  { %p557_p6 = por %p556_p5, %p555_p4 }
  0x10   :  { %p558_p7 = pnand %p557_p6, %p551_p3 }
  0x12   :  { %561 = shalt.err (!%p558_p7)
}
  0x13   :  { %35 = dma.hbm_to_vmem [thread:$0]  %s799_s1, 128, %s33_s25, [#allocation6]  }
  0x14   :  { %s562_s17 = scalar_lea.hbm %s798_s0, 128 }
  0x15   :  { %p563_p8 = scmp.ne.s32.totalorder %s798_s0, %s562_s17  ;;  %p566_p9 = scmp.lt.u32.totalorder %s562_s17, %s798_s0 }
  0x17   :  { %p568_p10 = pnand %p566_p9, %p563_p8 }
  0x19   :  { %571 = shalt.err (!%p568_p10)
}
  0x1a   :  { %s572_s22 = scalar_lea.vmem %s23_s27, 128  ;;  %p577_p12 = scmp.lt.s32.totalorder %s23_s27, %s23_s27 }
  0x1b   :  { %p573_p11 = scmp.ne.s32.totalorder %s23_s27, %s572_s22  ;;  %p578_p13 = scmp.lt.s32.totalorder %s572_s22, %s572_s22 }
  0x1d   :  { %p579_p0 = por %p578_p13, %p577_p12 }
  0x1f   :  { %p580_p1 = pnand %p579_p0, %p573_p11 }
  0x21   :  { %583 = shalt.err (!%p580_p1)
}
  0x22   :  { %25 = dma.hbm_to_vmem [thread:$0]  %s798_s0, 128, %s23_s27, [#allocation3]  }
  0x23   :  { %s660_s24 = smov [#allocation7]   ;;  %s584_s29 = scalar_lea.hbm %s801_s3, 2048 }
  0x24   :  { %s43_s25 = sshll.u32 %s660_s24, 4  ;;  %p585_p2 = scmp.ne.s32.totalorder %s801_s3, %s584_s29  ;;  %s44_s25 = int_to_ptr.vmem [resolvable:$true] %s43_s25 }
  0x25   :  { %p588_p3 = scmp.lt.u32.totalorder %s584_s29, %s801_s3 }
  0x27   :  { %p590_p4 = pnand %p588_p3, %p585_p2 }
  0x29   :  { %593 = shalt.err (!%p590_p4)
}
  0x2a   :  { %s594_s11 = scalar_lea.vmem %s44_s25, 2048  ;;  %p599_p6 = scmp.lt.s32.totalorder %s44_s25, %s44_s25 }
  0x2b   :  { %p595_p5 = scmp.ne.s32.totalorder %s44_s25, %s594_s11  ;;  %p600_p7 = scmp.lt.s32.totalorder %s594_s11, %s594_s11 }
  0x2d   :  { %p601_p8 = por %p600_p7, %p599_p6 }
  0x2f   :  { %p602_p9 = pnand %p601_p8, %p595_p5 }
  0x31   :  { %605 = shalt.err (!%p602_p9)
}
  0x32   :  { %s661_s0 = smov 128   ;;  %s662_s27 = smov 8  }
  0x33   :  { %49 = dma.hbm_to_vmem [thread:$0]  %s801_s3, 2048, %s44_s25, [#allocation6], %s661_s0, %s661_s0, %s662_s27  }
  0x34   :  { %s663_s14 = smov [#allocation8]   ;;  %s606_s18 = scalar_lea.hbm %s803_s5, 2048 }
  0x35   :  { %s57_s15 = sshll.u32 %s663_s14, 4  ;;  %p607_p10 = scmp.ne.s32.totalorder %s803_s5, %s606_s18  ;;  %s58_s15 = int_to_ptr.vmem [resolvable:$true] %s57_s15 }
  0x36   :  { %p610_p11 = scmp.lt.u32.totalorder %s606_s18, %s803_s5 }
  0x38   :  { %p612_p12 = pnand %p610_p11, %p607_p10 }
  0x3a   :  { %615 = shalt.err (!%p612_p12)
}
  0x3b   :  { %s616_s1 = scalar_lea.vmem %s58_s15, 2048  ;;  %p621_p0 = scmp.lt.s32.totalorder %s58_s15, %s58_s15 }
  0x3c   :  { %p617_p13 = scmp.ne.s32.totalorder %s58_s15, %s616_s1  ;;  %p622_p1 = scmp.lt.s32.totalorder %s616_s1, %s616_s1 }
  0x3e   :  { %p623_p2 = por %p622_p1, %p621_p0 }
  0x40   :  { %p624_p3 = pnand %p623_p2, %p617_p13 }
  0x42   :  { %627 = shalt.err (!%p624_p3)
}
  0x43   :  { %63 = dma.hbm_to_vmem [thread:$0]  %s803_s5, 2048, %s58_s15, [#allocation9], %s661_s0, %s661_s0, %s662_s27  }
  0x44   :  { %650 = dma.done.wait [#allocation3], 128  }
  0x45   :  { %651 = vsyncadd [#allocation3], 4294967168 }
  0x46   :  { %652 = dma.done.wait [#allocation6], 2176  }
  0x47   :  { %653 = vsyncadd [#allocation6], 4294965120 }
  0x48   :  { %654 = dma.done.wait [#allocation9], 2048  }
  0x49   :  { %655 = vsyncadd [#allocation9], 4294965248  ;;  %v664_v0 = vmov 0.0   ;;  %vm665_vm0 = vmmov 0   ;;  %v666_v1 = vmov 0.0|0.0   ;;  %vm121_vm1 = vcmask 64512  }
  0x4a   :  { %407 = vmatprep.subr.mxu0 %v664_v0  ;;  %409 = vmatprep.mubr.msk.f32.mxu0 %vm665_vm0, %v664_v0  ;;  %v79_v2 = vld [vmem:[#allocation5] sm:$0xff]  ;;  %v78_v3 = vld [vmem:[#allocation2] sm:$0xff]  ;;  %v81_v4 = vld [vmem:[#allocation7] sm:$0xff]  ;;  %s667_s29 = smov [#allocation10]  }
  0x4b   :  { %482 = vmatprep.subr.bf16.mxu1 %v666_v1  ;;  %444 = vmatprep.mubr.msk.f32.mxu1 %vm665_vm0, %v664_v0  ;;  %v82_v5 = vld [vmem:[#allocation7 + $0x8] sm:$0xff]  ;;  %v83_v6 = vld [vmem:[#allocation7 + $0x10] sm:$0xff]  ;;  %v84_v7 = vld [vmem:[#allocation7 + $0x18] sm:$0xff]  ;;  %s356_s30 = sshll.u32 %s667_s29, 4  ;;  %s357_s30 = int_to_ptr.vmem [resolvable:$true] %s356_s30 }
  0x4c   :  { %408 = vmatpush3.msra.mxu0 %v79_v2  ;;  %v483_v8 = vpack.c.bf16 %v82_v5, %v81_v4  ;;  %v486_v9 = vpack.c.bf16 %v84_v7, %v83_v6  ;;  %v85_v10 = vld [vmem:[#allocation7 + $0x20] sm:$0xff]  ;;  %v86_v11 = vld [vmem:[#allocation7 + $0x28] sm:$0xff]  ;;  %v87_v13 = vld [vmem:[#allocation7 + $0x30] sm:$0xff]  ;;  %s628_s8 = scalar_lea.vmem %s357_s30, 128  ;;  %p633_p5 = scmp.lt.s32.totalorder %s357_s30, %s357_s30 }
  0x4d   :  { %410 = vmatmul.mubr.msk.f32.vlgmr.msra.gmra.mrb[0].mxu0 %vm121_vm1, %v78_v3  ;;  %506 = vmatprep.subr.bf16.mxu0 %v666_v1  ;;  %v489_v12 = vpack.c.bf16 %v86_v11, %v85_v10  ;;  %v88_v14 = vld [vmem:[#allocation7 + $0x38] sm:$0xff]  ;;  %v89_v16 = vld [vmem:[#allocation7 + $0x40] sm:$0xff]  ;;  %v90_v17 = vld [vmem:[#allocation7 + $0x48] sm:$0xff]  ;;  %p629_p4 = scmp.ne.s32.totalorder %s357_s30, %s628_s8  ;;  %p634_p6 = scmp.lt.s32.totalorder %s628_s8, %s628_s8 }
  0x4e   :  { %479 = vmatprep.mubr.msk.f32.mxu0 %vm665_vm0, %v664_v0  ;;  %484 = vmatpush3.bf16.msra.mxu1 %v483_v8  ;;  %v492_v15 = vpack.c.bf16 %v88_v14, %v87_v13  ;;  %v495_v18 = vpack.c.bf16 %v90_v17, %v89_v16  ;;  %v91_v19 = vld [vmem:[#allocation7 + $0x50] sm:$0xff]  ;;  %v92_v20 = vld [vmem:[#allocation7 + $0x58] sm:$0xff]  ;;  %v93_v22 = vld [vmem:[#allocation7 + $0x60] sm:$0xff] }
  0x4f   :  { %485 = vmatprep.subr.bf16.mxu1 %v666_v1  ;;  %v498_v21 = vpack.c.bf16 %v92_v20, %v91_v19  ;;  %v94_v23 = vld [vmem:[#allocation7 + $0x68] sm:$0xff]  ;;  %v95_v25 = vld [vmem:[#allocation7 + $0x70] sm:$0xff]  ;;  %v96_v26 = vld [vmem:[#allocation7 + $0x78] sm:$0xff]  ;;  %p635_p7 = por %p634_p6, %p633_p5 }
  0x50   :  { %v501_v24 = vpack.c.bf16 %v94_v23, %v93_v22  ;;  %v504_v27 = vpack.c.bf16 %v96_v26, %v95_v25  ;;  %v98_v28 = vld [vmem:[#allocation8] sm:$0xff]  ;;  %v99_v29 = vld [vmem:[#allocation8 + $0x8] sm:$0xff]  ;;  %v100_v30 = vld [vmem:[#allocation8 + $0x10] sm:$0xff] }
  0x51   :  { %v507_v31 = vpack.c.bf16 %v99_v29, %v98_v28  ;;  %v101_v32 = vld [vmem:[#allocation8 + $0x18] sm:$0xff]  ;;  %v102_v34 = vld [vmem:[#allocation8 + $0x20] sm:$0xff]  ;;  %v103_v35 = vld [vmem:[#allocation8 + $0x28] sm:$0xff]  ;;  %p636_p8 = pnand %p635_p7, %p629_p4 }
  0x52   :  { %487 = vmatpush3.bf16.msra.mxu1 %v486_v9  ;;  %v510_v33 = vpack.c.bf16 %v101_v32, %v100_v30  ;;  %v513_v36 = vpack.c.bf16 %v103_v35, %v102_v34  ;;  %v104_v37 = vld [vmem:[#allocation8 + $0x30] sm:$0xff]  ;;  %v105_v38 = vld [vmem:[#allocation8 + $0x38] sm:$0xff]  ;;  %v106_v40 = vld [vmem:[#allocation8 + $0x40] sm:$0xff] }
  0x53   :  { %488 = vmatprep.subr.bf16.mxu1 %v666_v1  ;;  %508 = vmatpush3.bf16.msra.mxu0 %v507_v31  ;;  %v516_v39 = vpack.c.bf16 %v105_v38, %v104_v37  ;;  %v107_v41 = vld [vmem:[#allocation8 + $0x48] sm:$0xff]  ;;  %v108_v43 = vld [vmem:[#allocation8 + $0x50] sm:$0xff]  ;;  %v109_v44 = vld [vmem:[#allocation8 + $0x58] sm:$0xff] }
  0x54   :  { %509 = vmatprep.subr.bf16.mxu0 %v666_v1  ;;  %v519_v42 = vpack.c.bf16 %v107_v41, %v106_v40  ;;  %v522_v45 = vpack.c.bf16 %v109_v44, %v108_v43  ;;  %v110_v46 = vld [vmem:[#allocation8 + $0x60] sm:$0xff]  ;;  %v111_v47 = vld [vmem:[#allocation8 + $0x68] sm:$0xff]  ;;  %v367_v49 = vld [vmem:[%s800_s2] ss:$0 sm:$0xff] }
  0x55   :  { %v525_v48 = vpack.c.bf16 %v111_v47, %v110_v46  ;;  %v112_v54 = vld [vmem:[#allocation8 + $0x70] sm:$0xff]  ;;  %v113_v55 = vld [vmem:[#allocation8 + $0x78] sm:$0xff] }
  0x56   :  { %490 = vmatpush3.bf16.msra.mxu1 %v489_v12  ;;  %v528_v56 = vpack.c.bf16 %v113_v55, %v112_v54  ;;  %v369_v57 = vld [vmem:[%s802_s4] ss:$0 sm:$0xff] }
  0x57   :  { %491 = vmatprep.subr.bf16.mxu1 %v666_v1  ;;  %511 = vmatpush3.bf16.msra.mxu0 %v510_v33  ;;  %v370_v62 = vld [vmem:[%s804_s6] ss:$0 sm:$0xff] }
  0x58   :  { %512 = vmatprep.subr.bf16.mxu0 %v666_v1 }
  0x5a   :  { %493 = vmatpush3.bf16.msra.mxu1 %v492_v15 }
  0x5b   :  { %494 = vmatprep.subr.bf16.mxu1 %v666_v1  ;;  %514 = vmatpush3.bf16.msra.mxu0 %v513_v36 }
  0x5c   :  { %515 = vmatprep.subr.bf16.mxu0 %v666_v1 }
  0x5e   :  { %496 = vmatpush3.bf16.msra.mxu1 %v495_v18 }
  0x5f   :  { %497 = vmatprep.subr.bf16.mxu1 %v666_v1  ;;  %517 = vmatpush3.bf16.msra.mxu0 %v516_v39 }
  0x60   :  { %518 = vmatprep.subr.bf16.mxu0 %v666_v1 }
  0x62   :  { %499 = vmatpush3.bf16.msra.mxu1 %v498_v21 }
  0x63   :  { %500 = vmatprep.subr.bf16.mxu1 %v666_v1  ;;  %520 = vmatpush3.bf16.msra.mxu0 %v519_v42 }
  0x64   :  { %521 = vmatprep.subr.bf16.mxu0 %v666_v1 }
  0x66   :  { %502 = vmatpush3.bf16.msra.mxu1 %v501_v24 }
  0x67   :  { %503 = vmatprep.subr.bf16.mxu1 %v666_v1  ;;  %523 = vmatpush3.bf16.msra.mxu0 %v522_v45 }
  0x68   :  { %524 = vmatprep.subr.bf16.mxu0 %v666_v1 }
  0x6a   :  { %505 = vmatpush3.bf16.msra.mxu1 %v504_v27 }
  0x6b   :  { %526 = vmatpush3.bf16.msra.mxu0 %v525_v48 }
  0x6c   :  { %527 = vmatprep.subr.bf16.mxu0 %v666_v1 }
  0x6f   :  { %529 = vmatpush3.bf16.msra.mxu0 %v528_v56 }
 0x120   :  { %v191_v50 = vpop.f32.mrb[0].mxu0 }
 0x121   :  { %v192_v51 = vadd.f32 %v367_v49, %v191_v50  ;;  %v411_v52 = vpop.f32.mrb[1].mxu0 }
 0x123   :  { %v195_v53 = vmax.f32 %v192_v51, 0.0 }
 0x125   :  { %445 = vmatmul.mubr.f32.vlgmr.msra.gmra.mrb[0].mxu1 %v195_v53 }
 0x1f8   :  { %v268_v58 = vpop.f32.mrb[0].mxu1 }
 0x1f9   :  { %v269_v59 = vadd.f32 %v369_v57, %v268_v58  ;;  %v446_v60 = vpop.f32.mrb[1].mxu1 }
 0x1fb   :  { %v272_v61 = vmax.f32 %v269_v59, 0.0 }
 0x1fd   :  { %480 = vmatmul.mubr.f32.vlgmr.msra.gmra.mrb[2].mxu0 %v272_v61 }
 0x2d0   :  { %v345_v63 = vpop.f32.mrb[2].mxu0 }
 0x2d1   :  { %v346_v0 = vadd.f32 %v370_v62, %v345_v63  ;;  %v481_v1 = vpop.f32.mrb[3].mxu0 }
 0x2d3   :  { %349 = vst.msk [vmem:[#allocation10] sm:$0xff] %vm121_vm1, %v346_v0 }
 0x2d4   :  { %639 = shalt.err (!%p636_p8)
}
 0x2d5   :  { %s640_s10 = scalar_lea.hbm %s805_s7, 128 }
 0x2d6   :  { %p641_p9 = scmp.ne.s32.totalorder %s805_s7, %s640_s10  ;;  %p644_p10 = scmp.lt.u32.totalorder %s640_s10, %s805_s7 }
 0x2d8   :  { %p646_p11 = pnand %p644_p10, %p641_p9 }
 0x2da   :  { %649 = shalt.err (!%p646_p11)
}
 0x2db   :  { %359 = dma.vmem_to_hbm [thread:$0]  %s357_s30, 128, %s805_s7, [#allocation4]  }
 0x2dc   :  { %656 = dma.done.wait [#allocation4], 128  }
 0x2dd   :  { %657 = vsyncadd [#allocation4], 4294967168 }
 0x2de   :  { %363 = vsyncpa [#allocation3], 1 }
 0x2df   :  { %364 = vsyncpa [#allocation6], 1 }
 0x2e0   :  { %365 = vsyncpa [#allocation9], 1 }
 0x2e1   :  { %366 = vsyncpa [#allocation4], 1 }

</bundles_post_ra>
